<compile_context>
chip_gen: v6e
topology: v6e:2x2x1
jax: 0.10.0
libtpu: 0.0.40
codegen_flags: <defaults>
</compile_context>

<pallas_src>
import jax
import jax.numpy as jnp
from jax.experimental import pallas as pl
from jax.experimental.pallas import tpu as pltpu


def prompt_kernel(cls_ref, w_ref, b_ref, out_ref):
    # cls_ref: [bn, 128]   w_ref: [128, 16]   b_ref: [1, 16]   out_ref: [bn, 16]
    out = jnp.dot(cls_ref[...], w_ref[...], preferred_element_type=jnp.float32)
    out_ref[...] = out + b_ref[...]


def prepare_prompt_params(embed_prefix, weight, bias):
    """One-time parameter prep (NOT per call).

    Splits nn.Linear(2D, 16)'s weight, pre-transposes the class half, and
    folds the constant prefix contribution into an effective bias:
        b_eff = bias + embed_prefix @ W[:, :D].T
    Exactly equivalent to concat(prefix, cls) @ W.T + bias.
    """
    d = embed_prefix.shape[-1]
    w_prefix = weight[:, :d]                       # [16, D]
    w_cls_t = jnp.asarray(weight[:, d:].T)         # [D, 16], transposed once here
    b_eff = (bias[None, :] + embed_prefix @ w_prefix.T).astype(jnp.float32)  # [1, 16]
    return w_cls_t, b_eff


def prompt_forward(embed_cls, w_cls_t, b_eff, block_n=2048):
    """Hot path: ctx = embed_cls @ w_cls_t + b_eff, tiled over N.

    embed_cls / w_cls_t may be f32 or bf16; accumulation is always f32.
    """
    n, d = embed_cls.shape
    out_dim = w_cls_t.shape[-1]

    if n <= block_n:
        # Small N: a single block equal to the full array (always a legal
        # block shape, any n).  This is the launch-overhead-bound regime.
        bn = n
        grid_n = 1
    else:
        # Large N: fixed tile (multiple of 8), cdiv grid.  Partial last block
        # is safe (rows independent; OOB output writes are masked).  grid >= 2
        # so the "parallel" axis shards across both TensorCores on v7x.
        bn = max(8, (block_n // 8) * 8)
        grid_n = pl.cdiv(n, bn)

    cost = pl.CostEstimate(
        flops=2 * n * d * out_dim,
        bytes_accessed=(n * d * embed_cls.dtype.itemsize
                        + d * out_dim * w_cls_t.dtype.itemsize
                        + out_dim * b_eff.dtype.itemsize
                        + n * out_dim * 4),
        transcendentals=0,
    )

    return pl.pallas_call(
        prompt_kernel,
        out_shape=jax.ShapeDtypeStruct((n, out_dim), jnp.float32),
        grid=(grid_n,),
        in_specs=[
            pl.BlockSpec((bn, d), lambda i: (i, 0)),        # cls rows tile over N
            pl.BlockSpec((d, out_dim), lambda i: (0, 0)),   # weight resident
            pl.BlockSpec((1, out_dim), lambda i: (0, 0)),   # effective bias resident
        ],
        out_specs=pl.BlockSpec((bn, out_dim), lambda i: (i, 0)),
        compiler_params=pltpu.CompilerParams(
            dimension_semantics=("parallel",)),
        cost_estimate=cost,
    )(embed_cls, w_cls_t, b_eff)


if __name__ == "__main__":
    key = jax.random.PRNGKey(0)
    k_prefix, k_cls, k_w, k_b, k_big = jax.random.split(key, 5)

    HIDDEN = 128          # BERT pooler hidden size implied by nn.Linear(128*2, 16)
    N_CLS = 8             # number of class prompts
    OUT = 16

    # TODO(synk): the frozen BERT forward (self.bert(**x).pooler_output) is not
    # reimplemented; its pooler outputs are synthesized deterministically here.
    embed_prefix = jax.random.normal(k_prefix, (1, HIDDEN), dtype=jnp.float32)
    embed_cls = jax.random.normal(k_cls, (N_CLS, HIDDEN), dtype=jnp.float32)

    # Deterministic init of nn.Linear(256, 16) parameters.
    weight = jax.random.normal(k_w, (OUT, 2 * HIDDEN), dtype=jnp.float32) * 0.02
    bias = jax.random.normal(k_b, (OUT,), dtype=jnp.float32) * 0.02

    # One-time prep: fold prefix term + weight transpose out of the hot path.
    w_cls_t, b_eff = prepare_prompt_params(embed_prefix, weight, bias)
    w_cls_t = jax.block_until_ready(w_cls_t)
    b_eff = jax.block_until_ready(b_eff)

    # ---- Module-sized run (N=8): single block, overhead-bound regime. ----
    ctx = prompt_forward(embed_cls, w_cls_t, b_eff)
    ctx = jax.block_until_ready(ctx)

    emb_ref = jnp.concatenate(
        [jnp.broadcast_to(embed_prefix, (N_CLS, HIDDEN)), embed_cls], axis=-1
    )
    ref = emb_ref @ weight.T + bias
    assert ctx.shape == (N_CLS, OUT)
    assert jnp.allclose(ctx, ref, atol=1e-5, rtol=1e-5)

    # ---- Tiled-path validation: non-divisible N with a multi-block grid. ----
    N_BIG = 300
    embed_cls_big = jax.random.normal(k_big, (N_BIG, HIDDEN), dtype=jnp.float32)
    ctx_big = prompt_forward(embed_cls_big, w_cls_t, b_eff, block_n=128)
    ctx_big = jax.block_until_ready(ctx_big)
    ref_big = (jnp.concatenate(
        [jnp.broadcast_to(embed_prefix, (N_BIG, HIDDEN)), embed_cls_big], axis=-1)
        @ weight.T + bias)
    assert ctx_big.shape == (N_BIG, OUT)
    assert jnp.allclose(ctx_big, ref_big, atol=1e-5, rtol=1e-5)

    print("KERNEL_OK")
</pallas_src>

<mosaic_0001>
module attributes {stable_mosaic.version = 11 : i64} {
  func.func @prompt_kernel(%arg0: i32, %arg1: memref<8x128xf32, #tpu.memory_space<vmem>>, %arg2: memref<128x16xf32, #tpu.memory_space<vmem>>, %arg3: memref<1x16xf32, #tpu.memory_space<vmem>>, %arg4: memref<8x16xf32, #tpu.memory_space<vmem>>) attributes {dimension_semantics = [#tpu.dimension_semantics<parallel>], iteration_bounds = array<i64: 1>, scalar_prefetch = 0 : i64, scratch_operands = 0 : i64, tpu.core_type = #tpu.core_type<tc>, window_params = [{transform_indices = @transform_0, window_bounds = array<i64: 8, 128>}, {pipeline_mode = #tpu.pipeline_mode<synchronous>, transform_indices = @transform_1, window_bounds = array<i64: 128, 16>}, {pipeline_mode = #tpu.pipeline_mode<synchronous>, transform_indices = @transform_2, window_bounds = array<i64: 1, 16>}, {transform_indices = @transform_3, window_bounds = array<i64: 8, 16>}]} {
    %c0 = arith.constant 0 : index
    %c0_0 = arith.constant 0 : index
    %0 = vector.load %arg1[%c0, %c0_0] : memref<8x128xf32, #tpu.memory_space<vmem>>, vector<8x128xf32>
    %c0_1 = arith.constant 0 : index
    %c0_2 = arith.constant 0 : index
    %1 = vector.load %arg2[%c0_1, %c0_2] : memref<128x16xf32, #tpu.memory_space<vmem>>, vector<128x16xf32>
    %cst = arith.constant dense<0.000000e+00> : vector<8x16xf32>
    %2 = tpu.matmul %0, %1, %cst {dimension_numbers = #tpu.dot_dimension_numbers<[1], [0], [0], [1], [0, 0, 1, 1], [], []>} : vector<8x128xf32>, vector<128x16xf32>, vector<8x16xf32> -> vector<8x16xf32>
    %c0_3 = arith.constant 0 : index
    %c0_4 = arith.constant 0 : index
    %3 = vector.load %arg3[%c0_3, %c0_4] : memref<1x16xf32, #tpu.memory_space<vmem>>, vector<1x16xf32>
    %4 = vector.broadcast %3 : vector<1x16xf32> to vector<8x16xf32>
    %5 = arith.addf %2, %4 : vector<8x16xf32>
    %c0_5 = arith.constant 0 : index
    %c0_6 = arith.constant 0 : index
    %6 = vector.load %arg4[%c0_5, %c0_6] : memref<8x16xf32, #tpu.memory_space<vmem>>, vector<8x16xf32>
    tpu.vector_store %arg4[%c0_5, %c0_6], %5 {strides = array<i32>} : memref<8x16xf32, #tpu.memory_space<vmem>>, vector<8x16xf32>,
    return
  }
  func.func @transform_0(%arg0: i32) -> (i32, i32) {
    %c0_i32 = arith.constant 0 : i32
    %c0_i32_0 = arith.constant 0 : i32
    return %arg0, %c0_i32 : i32, i32
  }
  func.func @transform_1(%arg0: i32) -> (i32, i32) {
    %c0_i32 = arith.constant 0 : i32
    %c0_i32_0 = arith.constant 0 : i32
    %c0_i32_1 = arith.constant 0 : i32
    return %c0_i32, %c0_i32_0 : i32, i32
  }
  func.func @transform_2(%arg0: i32) -> (i32, i32) {
    %c0_i32 = arith.constant 0 : i32
    %c0_i32_0 = arith.constant 0 : i32
    %c0_i32_1 = arith.constant 0 : i32
    return %c0_i32, %c0_i32_0 : i32, i32
  }
  func.func @transform_3(%arg0: i32) -> (i32, i32) {
    %c0_i32 = arith.constant 0 : i32
    %c0_i32_0 = arith.constant 0 : i32
    return %arg0, %c0_i32 : i32, i32
  }
}

</mosaic_0001>

<bundles_post_ra>
// kernel: tpu_custom_call.1
= control target key start
LH: loop header
LB: loop body
LE: loop exit
PB: predicated region body
PF: predicated region fallthrough
CT: control target
= control target key end

     0   :  { %v203_v1 = vmov 0.0   ;;  %vm204_vm0 = vmmov 0   ;;  %s283_s0 = inlined_call_operand.vmem [shape: f32[8,128], index: 0, kind: input, shape index: {}]   ;;  %s284_s1 = inlined_call_operand.vmem [shape: f32[128,16], index: 1, kind: input, shape index: {}]   ;;  %s285_s2 = inlined_call_operand.vmem [shape: f32[1,16], index: 2, kind: input, shape index: {}]   ;;  %s286_s3 = inlined_call_operand.hbm [shape: f32[8,16], index: 3, kind: output, shape index: {}]  }
   0x1   :  { %v31_v0 = vld [vmem:[%s284_s1 + $0x78] sm:$0xff]  ;;  %143 = vmatprep.subr.mxu0 %v203_v1  ;;  %v30_v2 = vld [vmem:[%s284_s1 + $0x70] sm:$0xff]  ;;  %175 = vmatprep.mubr.msk.f32.mxu0 %vm204_vm0, %v203_v1  ;;  %v29_v3 = vld [vmem:[%s284_s1 + $0x68] sm:$0xff] }
   0x2   :  { %144 = vmatpush3.msra.mxu0 %v31_v0  ;;  %v28_v4 = vld [vmem:[%s284_s1 + $0x60] sm:$0xff] }
   0x3   :  { %145 = vmatprep.subr.mxu0 %v203_v1 }
   0x4   :  { %146 = vmatpush3.msra.mxu0 %v30_v2 }
   0x5   :  { %147 = vmatprep.subr.mxu0 %v203_v1 }
   0x6   :  { %148 = vmatpush3.msra.mxu0 %v29_v3 }
   0x7   :  { %8 = vsyncpa [#allocation3], 0  ;;  %149 = vmatprep.subr.mxu0 %v203_v1  ;;  %v27_v5 = vld [vmem:[%s284_s1 + $0x58] sm:$0xff]  ;;  %v26_v6 = vld [vmem:[%s284_s1 + $0x50] sm:$0xff]  ;;  %s205_s21 = smov [#allocation2]   ;;  %vm109_vm1 = vcmask 130048  }
   0x8   :  { %150 = vmatpush3.msra.mxu0 %v28_v4  ;;  %v25_v7 = vld [vmem:[%s284_s1 + $0x48] sm:$0xff]  ;;  %v24_v8 = vld [vmem:[%s284_s1 + $0x40] sm:$0xff]  ;;  %v23_v9 = vld [vmem:[%s284_s1 + $0x38] sm:$0xff]  ;;  %s117_s22 = sshll.u32 %s205_s21, 4  ;;  %s118_s22 = int_to_ptr.vmem [resolvable:$true] %s117_s22 }
   0x9   :  { %151 = vmatprep.subr.mxu0 %v203_v1  ;;  %v22_v10 = vld [vmem:[%s284_s1 + $0x30] sm:$0xff]  ;;  %v21_v11 = vld [vmem:[%s284_s1 + $0x28] sm:$0xff]  ;;  %v20_v12 = vld [vmem:[%s284_s1 + $0x20] sm:$0xff]  ;;  %p186_p1 = scmp.lt.s32.totalorder %s118_s22, %s118_s22 }
   0xa   :  { %152 = vmatpush3.msra.mxu0 %v27_v5  ;;  %v19_v13 = vld [vmem:[%s284_s1 + $0x18] sm:$0xff]  ;;  %v18_v14 = vld [vmem:[%s284_s1 + $0x10] sm:$0xff]  ;;  %v17_v15 = vld [vmem:[%s284_s1 + $0x8] sm:$0xff] }
   0xb   :  { %153 = vmatprep.subr.mxu0 %v203_v1  ;;  %v16_v16 = vld [vmem:[%s284_s1] sm:$0xff]  ;;  %s181_s1 = scalar_lea.vmem %s118_s22, 128 }
   0xc   :  { %154 = vmatpush3.msra.mxu0 %v26_v6  ;;  %v15_v17 = vld [vmem:[%s283_s0] sm:$0xff]  ;;  %p182_p0 = scmp.ne.s32.totalorder %s118_s22, %s181_s1  ;;  %p187_p2 = scmp.lt.s32.totalorder %s181_s1, %s181_s1 }
   0xd   :  { %155 = vmatprep.subr.mxu0 %v203_v1  ;;  %v125_v18 = vld [vmem:[%s285_s2] ss:$0 sm:$0xff] }
   0xe   :  { %156 = vmatpush3.msra.mxu0 %v25_v7  ;;  %p188_p3 = por %p187_p2, %p186_p1 }
   0xf   :  { %157 = vmatprep.subr.mxu0 %v203_v1 }
  0x10   :  { %158 = vmatpush3.msra.mxu0 %v24_v8  ;;  %p189_p4 = pnand %p188_p3, %p182_p0 }
  0x11   :  { %159 = vmatprep.subr.mxu0 %v203_v1 }
  0x12   :  { %160 = vmatpush3.msra.mxu0 %v23_v9 }
  0x13   :  { %161 = vmatprep.subr.mxu0 %v203_v1 }
  0x14   :  { %162 = vmatpush3.msra.mxu0 %v22_v10 }
  0x15   :  { %163 = vmatprep.subr.mxu0 %v203_v1 }
  0x16   :  { %164 = vmatpush3.msra.mxu0 %v21_v11 }
  0x17   :  { %165 = vmatprep.subr.mxu0 %v203_v1 }
  0x18   :  { %166 = vmatpush3.msra.mxu0 %v20_v12 }
  0x19   :  { %167 = vmatprep.subr.mxu0 %v203_v1 }
  0x1a   :  { %168 = vmatpush3.msra.mxu0 %v19_v13 }
  0x1b   :  { %169 = vmatprep.subr.mxu0 %v203_v1 }
  0x1c   :  { %170 = vmatpush3.msra.mxu0 %v18_v14 }
  0x1d   :  { %171 = vmatprep.subr.mxu0 %v203_v1 }
  0x1e   :  { %172 = vmatpush3.msra.mxu0 %v17_v15 }
  0x1f   :  { %173 = vmatprep.subr.mxu0 %v203_v1 }
  0x20   :  { %174 = vmatpush3.msra.mxu0 %v16_v16 }
  0x21   :  { %176 = vmatmul.mubr.f32.vlgmr.msra.gmra.mxu0 %v15_v17 }
  0xe1   :  { %v105_v19 = vpop.f32.mrf.mxu0 }
  0xe2   :  { %v106_v20 = vadd.f32 %v125_v18, %v105_v19 }
  0xe3   :  { %v177_v21 = vpop.f32.mrf.mxu0 }
  0xe4   :  { %110 = vst.msk [vmem:[#allocation2] sm:$0xff] %vm109_vm1, %v106_v20 }
  0xe5   :  { %192 = shalt.err (!%p189_p4)
}
  0xe6   :  { %120 = dma.vmem_to_hbm [thread:$0]  %s118_s22, 128, %s286_s3, [#allocation3]  }
  0xe7   :  { %201 = dma.done.wait [#allocation3], 128  }
  0xe8   :  { %202 = vsyncadd [#allocation3], 4294967168 }
  0xe9   :  { %124 = vsyncpa [#allocation3], 1 }

</bundles_post_ra>
